<compile_context>
chip_gen: v5e
topology: v5e:2x2
jax: 0.10.0
libtpu: 0.0.40
codegen_flags: <defaults>
</compile_context>

<pallas_src>
import jax
import jax.numpy as jnp
from jax.experimental import pallas as pl
from jax.experimental.pallas import tpu as pltpu


def mf_dot_kernel(u_ref, v_ref, o_ref):
    # u_ref, v_ref: (Fp, tb) f32 tiles in VMEM (factors on sublanes, batch on
    # lanes); o_ref: (1, tb) f32 lane-dense output row.
    # Elementwise multiply on the VPU, sublane-reduce on the XLU, full vst out.
    o_ref[...] = jnp.sum(u_ref[...] * v_ref[...], axis=0, keepdims=True)


def _round_up(x, m):
    return pl.cdiv(x, m) * m


def matrix_factorization_forward(user_factors, item_factors, user, item, *, tb=1024):
    """Equivalent of (user_factors[user] * item_factors[item]).sum(1)."""
    B = user.shape[0]
    F = user_factors.shape[1]

    # Glue: embedding gather (row lookup) in plain JAX, then transpose so the
    # factor axis maps to sublanes and the batch axis maps to lanes.
    u = jnp.take(user_factors, user, axis=0).astype(jnp.float32).T   # (F, B)
    v = jnp.take(item_factors, item, axis=0).astype(jnp.float32).T   # (F, B)

    # Pad factor axis only to sublane granularity (8), not to 128 lanes.
    Fp = _round_up(F, 8)

    # Batch tile: multiple of 128 lanes, no bigger than needed for small B,
    # and capped so 2 inputs x 2 pipeline buffers fit comfortably in the
    # smallest default scoped VMEM (v5e: 16 MiB).
    tb = max(128, (int(tb) // 128) * 128)
    tb = min(tb, _round_up(B, 128))
    vmem_budget = 12 * 1024 * 1024  # leave headroom under 16 MiB
    while tb > 128 and (2 * 2 * Fp * tb * 4) > vmem_budget:
        tb //= 2
    tb = max(128, (tb // 128) * 128)

    Bp = _round_up(B, tb)

    # Zero padding is sound for a sum reduction.
    u = jnp.pad(u, ((0, Fp - F), (0, Bp - B)))
    v = jnp.pad(v, ((0, Fp - F), (0, Bp - B)))

    out = pl.pallas_call(
        mf_dot_kernel,
        out_shape=jax.ShapeDtypeStruct((1, Bp), jnp.float32),
        grid=(Bp // tb,),
        in_specs=[
            pl.BlockSpec((Fp, tb), lambda i: (0, i)),
            pl.BlockSpec((Fp, tb), lambda i: (0, i)),
        ],
        out_specs=pl.BlockSpec((1, tb), lambda i: (0, i)),
        compiler_params=pltpu.CompilerParams(
            dimension_semantics=("parallel",)),
    )(u, v)

    return out[0, :B]  # (B,) float32, matching torch's .sum(1)


if __name__ == "__main__":
    # Module hyperparameters (small, consistent with nn.Embedding shapes).
    n_users, n_items, n_factors = 50, 40, 20
    batch = 8

    key = jax.random.PRNGKey(0)
    k_u, k_i, k_uid, k_iid = jax.random.split(key, 4)

    # Deterministic parameter init (nn.Embedding default ~ N(0, 1)).
    user_factors = jax.random.normal(k_u, (n_users, n_factors), dtype=jnp.float32)
    item_factors = jax.random.normal(k_i, (n_items, n_factors), dtype=jnp.float32)

    # Index inputs (torch would use int64; int32 is the natural TPU index type).
    user = jax.random.randint(k_uid, (batch,), 0, n_users, dtype=jnp.int32)
    item = jax.random.randint(k_iid, (batch,), 0, n_items, dtype=jnp.int32)

    out = matrix_factorization_forward(user_factors, item_factors, user, item)
    out = jax.block_until_ready(out)

    # Reference check in plain JAX.
    ref = jnp.sum(user_factors[user] * item_factors[item], axis=1)
    assert out.shape == (batch,)
    assert jnp.allclose(out, ref, atol=1e-5, rtol=1e-5)

    print("KERNEL_OK")
</pallas_src>

<mosaic_0001>
module attributes {stable_mosaic.version = 11 : i64} {
  func.func @mf_dot_kernel(%arg0: i32, %arg1: memref<24x128xf32, #tpu.memory_space<vmem>>, %arg2: memref<24x128xf32, #tpu.memory_space<vmem>>, %arg3: memref<1x128xf32, #tpu.memory_space<vmem>>) attributes {dimension_semantics = [#tpu.dimension_semantics<parallel>], iteration_bounds = array<i64: 1>, scalar_prefetch = 0 : i64, scratch_operands = 0 : i64, tpu.core_type = #tpu.core_type<tc>, window_params = [{transform_indices = @transform_0, window_bounds = array<i64: 24, 128>}, {transform_indices = @transform_1, window_bounds = array<i64: 24, 128>}, {transform_indices = @transform_2, window_bounds = array<i64: 1, 128>}]} {
    %c0 = arith.constant 0 : index
    %c0_0 = arith.constant 0 : index
    %0 = vector.load %arg1[%c0, %c0_0] : memref<24x128xf32, #tpu.memory_space<vmem>>, vector<24x128xf32>
    %c0_1 = arith.constant 0 : index
    %c0_2 = arith.constant 0 : index
    %1 = vector.load %arg2[%c0_1, %c0_2] : memref<24x128xf32, #tpu.memory_space<vmem>>, vector<24x128xf32>
    %2 = arith.mulf %0, %1 : vector<24x128xf32>
    %cst = arith.constant dense<0.000000e+00> : vector<128xf32>
    %3 = vector.multi_reduction <add>, %2, %cst [0] : vector<24x128xf32> to vector<128xf32>
    %4 = vector.shape_cast %3 : vector<128xf32> to vector<1x128xf32>
    %c0_3 = arith.constant 0 : index
    %c0_4 = arith.constant 0 : index
    %5 = vector.load %arg3[%c0_3, %c0_4] : memref<1x128xf32, #tpu.memory_space<vmem>>, vector<1x128xf32>
    tpu.vector_store %arg3[%c0_3, %c0_4], %4 {strides = array<i32>} : memref<1x128xf32, #tpu.memory_space<vmem>>, vector<1x128xf32>,
    return
  }
  func.func @transform_0(%arg0: i32) -> (i32, i32) {
    %c0_i32 = arith.constant 0 : i32
    %c0_i32_0 = arith.constant 0 : i32
    return %c0_i32, %arg0 : i32, i32
  }
  func.func @transform_1(%arg0: i32) -> (i32, i32) {
    %c0_i32 = arith.constant 0 : i32
    %c0_i32_0 = arith.constant 0 : i32
    return %c0_i32, %arg0 : i32, i32
  }
  func.func @transform_2(%arg0: i32) -> (i32, i32) {
    %c0_i32 = arith.constant 0 : i32
    %c0_i32_0 = arith.constant 0 : i32
    return %c0_i32, %arg0 : i32, i32
  }
}

</mosaic_0001>

<bundles_post_ra>
// kernel: tpu_custom_call.1
= control target key start
LH: loop header
LB: loop body
LE: loop exit
PB: predicated region body
PF: predicated region fallthrough
CT: control target
= control target key end

     0   :  { %7 = vsyncpa [#allocation3], 0  ;;  %s192_s0 = inlined_call_operand.hbm [shape: f32[24,128], index: 0, kind: input, shape index: {}]   ;;  %s193_s1 = inlined_call_operand.hbm [shape: f32[24,128], index: 1, kind: input, shape index: {}]   ;;  %s194_s2 = inlined_call_operand.hbm [shape: f32[1,128], index: 2, kind: output, shape index: {}]  }
   0x1   :  { %8 = vsyncpa [#allocation6], 0 }
   0x2   :  { %9 = vsyncpa [#allocation4], 0  ;;  %s14_s11 = sshll.u32 %s192_s0, 4  ;;  %s163_s12 = smov [#allocation2]   ;;  %s15_s11 = int_to_ptr.hbm [resolvable:$true] %s14_s11 }
   0x3   :  { %s16_s13 = sshll.u32 %s163_s12, 4  ;;  %s27_s16 = sshll.u32 %s193_s1, 4  ;;  %s17_s13 = int_to_ptr.vmem [resolvable:$true] %s16_s13  ;;  %s28_s16 = int_to_ptr.hbm [resolvable:$true] %s27_s16 }
   0x4   :  { %s164_s17 = smov 128   ;;  %s165_s18 = smov 8  }
   0x5   :  { %22 = dma.hbm_to_vmem [thread:$0]  %s15_s11, 384, %s17_s13, [#allocation3], %s164_s17, %s164_s17, %s165_s18  }
   0x6   :  { %s166_s19 = smov [#allocation5]  }
   0x7   :  { %s29_s20 = sshll.u32 %s166_s19, 4  ;;  %s30_s20 = int_to_ptr.vmem [resolvable:$true] %s29_s20 }
   0x8   :  { %35 = dma.hbm_to_vmem [thread:$0]  %s28_s16, 384, %s30_s20, [#allocation6], %s164_s17, %s164_s17, %s165_s18  }
   0x9   :  { %157 = dma.done.wait [#allocation3], 384  }
   0xa   :  { %158 = vsyncadd [#allocation3], 4294966912 }
   0xb   :  { %159 = dma.done.wait [#allocation6], 384  }
   0xc   :  { %160 = vsyncadd [#allocation6], 4294966912  ;;  %v44_v0 = vld [vmem:[#allocation2] sm:$0xff]  ;;  %v45_v1 = vld [vmem:[#allocation2 + $0x8] sm:$0xff]  ;;  %s167_s0 = smov [#allocation7]   ;;  %s69_s23 = sshll.u32 %s194_s2, 4  ;;  %s70_s23 = int_to_ptr.hbm [resolvable:$true] %s69_s23 }
   0xd   :  { %v46_v2 = vld [vmem:[#allocation2 + $0x10] sm:$0xff]  ;;  %v47_v3 = vld [vmem:[#allocation5] sm:$0xff]  ;;  %v48_v4 = vld [vmem:[#allocation5 + $0x8] sm:$0xff]  ;;  %s67_s1 = sshll.u32 %s167_s0, 4  ;;  %s68_s1 = int_to_ptr.vmem [resolvable:$true] %s67_s1 }
   0xe   :  { %v49_v5 = vld [vmem:[#allocation5 + $0x10] sm:$0xff]  ;;  %v50_v6 = vmul.f32 %v47_v3, %v44_v0  ;;  %v51_v7 = vmul.f32 %v48_v4, %v45_v1 }
   0xf   :  { %v52_v8 = vmul.f32 %v49_v5, %v46_v2 }
  0x10   :  { %v53_v9 = vadd.f32 %v51_v7, %v50_v6 }
  0x12   :  { %v54_v10 = vadd.f32 %v53_v9, %v52_v8 }
  0x14   :  { %v55_v11 = vrot.slane %v54_v10, 4 }
  0x16   :  { %v56_v12 = vadd.f32 %v55_v11, %v54_v10 }
  0x18   :  { %v57_v13 = vrot.slane %v56_v12, 2 }
  0x1a   :  { %v58_v14 = vadd.f32 %v57_v13, %v56_v12 }
  0x1c   :  { %v59_v15 = vrot.slane %v58_v14, 1 }
  0x1e   :  { %v60_v16 = vadd.f32 %v59_v15, %v58_v14 }
  0x20   :  { %61 = vst [vmem:[#allocation7] sm:$0x1] %v60_v16 }
  0x21   :  { %72 = dma.vmem_to_hbm [thread:$0]  %s68_s1, 16, %s70_s23, [#allocation4]  }
  0x22   :  { %161 = dma.done.wait [#allocation4], 16  }
  0x23   :  { %162 = vsyncadd [#allocation4], 4294967280 }
  0x24   :  { %77 = vsyncpa [#allocation3], 1 }
  0x25   :  { %78 = vsyncpa [#allocation6], 1 }
  0x26   :  { %79 = vsyncpa [#allocation4], 1 }

</bundles_post_ra>
